<compile_context>
chip_gen: v6e
topology: v6e:2x2x1
jax: 0.10.0
libtpu: 0.0.40
codegen_flags: <defaults>
</compile_context>

<pallas_src>
from functools import partial

import jax
import jax.numpy as jnp
from jax import lax
from jax.experimental import pallas as pl
from jax.experimental.pallas import tpu as pltpu

AUDIO_LN_EPS = 1e-5            # torch.nn.functional.layer_norm default eps
VIDEO_NORM_MEAN = 0.421        # deterministic VideoTransform normalize constants
VIDEO_NORM_STD = 0.165
_V_SCALE = 1.0 / (255.0 * VIDEO_NORM_STD)   # fused  (x/255 - mean)/std == x*S + B
_V_BIAS = -VIDEO_NORM_MEAN / VIDEO_NORM_STD

_AUDIO_ROWS_PER_CHUNK = 512    # 512 dense rows = 64K samples per streamed chunk
_AUDIO_FUSED_LIMIT = 8 << 20   # keep whole mono resident in VMEM up to 8 MiB
_VID_OUT_BLOCK_ELEMS = (8 << 20) // 4   # ~8 MiB of f32 output per video grid step
_U8_SUBLANES = 32              # uint8 native VMEM tile is (32, 128)


def _round_up(x, m):
    return -(-x // m) * m


def _vmem_limit(nbytes):
    # generous floor + headroom; well under physical VMEM on v5e/v6e/v7x
    return int(min(max(nbytes + (8 << 20), 16 << 20), 48 << 20))


# --------------------- audio: shared mono-mix + Welford ----------------------
def _welford_chunk(w_ref, acc_ref, i, rb, n_total):
    """Mono-mix one dense (rb, 128) chunk and fold its statistics into the
    running (count, mean, M2) accumulator in SMEM.  Returns the mono chunk and
    the *combined* running (n, mean, m2)."""
    num_ch = w_ref.shape[0]
    # channel mix as explicit VPU adds over the leading axis (no XLU reduce)
    mono = w_ref[0].astype(jnp.float32)
    for c in range(1, num_ch):
        mono = mono + w_ref[c].astype(jnp.float32)
    mono = mono * (1.0 / num_ch)                               # (rb, 128)

    # per-chunk stats, masked against the true (un-padded) waveform length
    row0 = i * rb
    ridx = lax.broadcasted_iota(jnp.int32, (rb, 128), 0)
    lidx = lax.broadcasted_iota(jnp.int32, (rb, 128), 1)
    mask = (row0 * 128 + ridx * 128 + lidx) < n_total
    n2 = jnp.minimum(jnp.float32(rb * 128),
                     (n_total - row0 * 128).astype(jnp.float32))
    mean2 = jnp.sum(jnp.where(mask, mono, 0.0)) / n2
    d = jnp.where(mask, mono - mean2, 0.0)
    m2_2 = jnp.sum(d * d)

    # Chan / Welford parallel combine (no raw sum-of-squares cancellation)
    n1, mean1, m2_1 = acc_ref[0], acc_ref[1], acc_ref[2]
    n = n1 + n2
    delta = mean2 - mean1
    mean = mean1 + delta * (n2 / n)
    m2 = m2_1 + m2_2 + delta * delta * (n1 * n2 / n)
    acc_ref[0], acc_ref[1], acc_ref[2] = n, mean, m2
    return mono, n, mean, m2


# --------------- audio: fused single-call kernel (mono fits VMEM) ------------
def _audio_fused_kernel(w_ref, o_ref, acc_ref, *, n_total, rb):
    # grid = (2, nchunks): phase 0 = mix + stats, phase 1 = normalize in place.
    # o_ref is the full (rows_pad, 128) mono buffer, resident in VMEM across
    # the whole grid, written back to HBM exactly once.
    p = pl.program_id(0)
    i = pl.program_id(1)

    @pl.when((p == 0) & (i == 0))
    def _init():
        acc_ref[0] = jnp.float32(0.0)   # running count
        acc_ref[1] = jnp.float32(0.0)   # running mean
        acc_ref[2] = jnp.float32(0.0)   # running M2

    @pl.when(p == 0)
    def _mix_and_stats():
        mono, n, _, m2 = _welford_chunk(w_ref, acc_ref, i, rb, n_total)
        o_ref[pl.ds(pl.multiple_of(i * rb, 8), rb), :] = mono

        @pl.when(i == pl.num_programs(1) - 1)
        def _finalize_stats():
            # biased variance == F.layer_norm; acc[1] already holds the mean
            acc_ref[2] = lax.rsqrt(m2 / n + AUDIO_LN_EPS)

    @pl.when(p == 1)
    def _normalize():
        row0 = pl.multiple_of(i * rb, 8)
        o_ref[pl.ds(row0, rb), :] = (
            (o_ref[pl.ds(row0, rb), :] - acc_ref[1]) * acc_ref[2])


# ------------- audio: two-pass fallback (very long utterances) ---------------
def _audio_stats_kernel(w_ref, mono_ref, stats_ref, acc_ref, *, n_total, rb):
    i = pl.program_id(0)

    @pl.when(i == 0)
    def _init():
        acc_ref[0] = jnp.float32(0.0)
        acc_ref[1] = jnp.float32(0.0)
        acc_ref[2] = jnp.float32(0.0)

    mono, n, mean, m2 = _welford_chunk(w_ref, acc_ref, i, rb, n_total)
    mono_ref[...] = mono

    @pl.when(i == pl.num_programs(0) - 1)
    def _finalize():
        # stats returned as two SMEM scalars (no lane-encoded VMEM slab)
        stats_ref[0] = mean
        stats_ref[1] = lax.rsqrt(m2 / n + AUDIO_LN_EPS)


def _audio_norm_kernel(stats_ref, mono_ref, o_ref):
    o_ref[...] = (mono_ref[...] - stats_ref[0]) * stats_ref[1]


def process_audio(waveform, max_fused_bytes=_AUDIO_FUSED_LIMIT):
    """waveform: (C, N) -> (1, N) float32 mono, utterance layer-normalized."""
    C, N = waveform.shape
    rows = pl.cdiv(N, 128)
    rb = min(_round_up(rows, 8), _AUDIO_ROWS_PER_CHUNK)   # dense rows per chunk
    rows_pad = _round_up(rows, rb)
    n_pad = rows_pad * 128
    if n_pad != N:
        # pad once so the stream reshapes to a sublane/lane-dense (rows, 128)
        # grid (stats/output are masked/trimmed against the true length N)
        waveform = jnp.pad(waveform, ((0, 0), (0, n_pad - N)))
    w = waveform.reshape(C, rows_pad, 128)                 # metadata-only split
    nchunks = rows_pad // rb

    in_chunk_bytes = 2 * C * rb * 128 * 4                  # double-buffered input
    mono_bytes = rows_pad * 128 * 4

    if mono_bytes <= max_fused_bytes:
        # single fused call: the mono intermediate never round-trips HBM.
        # TODO(synk): v7x megacore could additionally split the stream in two
        # halves on a leading "parallel" axis with per-half Welford partials.
        mono = pl.pallas_call(
            partial(_audio_fused_kernel, n_total=N, rb=rb),
            out_shape=jax.ShapeDtypeStruct((rows_pad, 128), jnp.float32),
            grid=(2, nchunks),
            in_specs=[pl.BlockSpec((C, rb, 128),
                                   lambda p, i: (0, i * (1 - p), 0))],
            out_specs=pl.BlockSpec((rows_pad, 128), lambda p, i: (0, 0)),
            scratch_shapes=[pltpu.SMEM((3,), jnp.float32)],
            compiler_params=pltpu.CompilerParams(
                dimension_semantics=("arbitrary", "arbitrary"),
                vmem_limit_bytes=_vmem_limit(in_chunk_bytes + 2 * mono_bytes)),
        )(w)
    else:
        # mono too large to keep resident: dense two-pass through HBM
        vmem = _vmem_limit(in_chunk_bytes + 4 * rb * 128 * 4)
        mono, stats = pl.pallas_call(
            partial(_audio_stats_kernel, n_total=N, rb=rb),
            out_shape=(jax.ShapeDtypeStruct((rows_pad, 128), jnp.float32),
                       jax.ShapeDtypeStruct((2,), jnp.float32)),
            grid=(nchunks,),
            in_specs=[pl.BlockSpec((C, rb, 128), lambda i: (0, i, 0))],
            out_specs=(pl.BlockSpec((rb, 128), lambda i: (i, 0)),
                       pl.BlockSpec(memory_space=pltpu.MemorySpace.SMEM)),
            scratch_shapes=[pltpu.SMEM((3,), jnp.float32)],
            compiler_params=pltpu.CompilerParams(
                dimension_semantics=("arbitrary",), vmem_limit_bytes=vmem),
        )(w)
        mono = pl.pallas_call(
            _audio_norm_kernel,
            out_shape=jax.ShapeDtypeStruct((rows_pad, 128), jnp.float32),
            grid=(nchunks,),
            in_specs=[pl.BlockSpec(memory_space=pltpu.MemorySpace.SMEM),
                      pl.BlockSpec((rb, 128), lambda i: (i, 0))],
            out_specs=pl.BlockSpec((rb, 128), lambda i: (i, 0)),
            compiler_params=pltpu.CompilerParams(
                dimension_semantics=("parallel",), vmem_limit_bytes=vmem),
        )(stats, mono)

    mono = mono.reshape(1, n_pad)                          # metadata-only merge
    return mono if n_pad == N else mono[:, :N]


# ------------------------------ video kernel ---------------------------------
def _video_kernel(v_ref, o_ref):
    # uint8 -> f32 cast in-kernel (4x less HBM read than pre-casting);
    # /255 and mean/std normalize folded into a single scale+bias.
    o_ref[...] = (v_ref[...].astype(jnp.float32) * _V_SCALE
                  + _V_BIAS).astype(o_ref.dtype)


def _video_tiles(num_frames, chw):
    """Pick (frame_tile, lane_tile) for a lane-dense (T, C*H*W) stream."""
    if chw * _U8_SUBLANES <= _VID_OUT_BLOCK_ELEMS:
        # whole rows fit the ~8 MiB budget: tile over frames only
        cb = chw
        tb = (_VID_OUT_BLOCK_ELEMS // chw) // _U8_SUBLANES * _U8_SUBLANES
        if tb >= num_frames:
            tb = num_frames
            # v7x megacore: keep >= 2 "parallel" grid steps when there is work
            if num_frames >= 2 * _U8_SUBLANES:
                tb = (num_frames // 2) // _U8_SUBLANES * _U8_SUBLANES
        return tb, cb
    # very large frames: also tile the flattened C*H*W axis (128-lane multiples)
    cb = max(128, (_VID_OUT_BLOCK_ELEMS // _U8_SUBLANES) // 128 * 128)
    tb = min(num_frames, _U8_SUBLANES)
    return tb, cb


def process_video(video_thwc, out_dtype=jnp.float32):
    """video: (T, H, W, C) uint8 (read_video layout) -> (T, C, H, W) normalized.
    Pass out_dtype=jnp.bfloat16 if the downstream model runs in bf16 (halves
    the dominant store traffic)."""
    T, H, W, C = video_thwc.shape
    chw = C * H * W
    if C == 1:
        # grayscale mouth crops: (T,H,W,1) flattens to the final layout directly
        v = video_thwc.reshape(T, chw)
    else:
        # THWC->TCHW permute done once on the narrow uint8 data (4x cheaper than
        # relaying out f32); the flattened (T, C*H*W) view keeps kernel I/O
        # lane-dense so the f32 result is written once, already in final layout.
        # TODO(synk): if profiling shows this serial XLA relayout dominating,
        # fuse the width-3 channel de-interleave into the kernel with
        # per-channel strided output stores.
        v = jnp.transpose(video_thwc, (0, 3, 1, 2)).reshape(T, chw)

    tb, cb = _video_tiles(T, chw)
    grid = (pl.cdiv(T, tb), pl.cdiv(chw, cb))
    out = pl.pallas_call(
        _video_kernel,
        out_shape=jax.ShapeDtypeStruct((T, chw), out_dtype),
        grid=grid,
        in_specs=[pl.BlockSpec((tb, cb), lambda i, j: (i, j))],
        out_specs=pl.BlockSpec((tb, cb), lambda i, j: (i, j)),
        compiler_params=pltpu.CompilerParams(
            dimension_semantics=("parallel", "parallel"),
            vmem_limit_bytes=_vmem_limit(2 * tb * cb * (4 + 1))),
    )(v)
    return out.reshape(T, C, H, W)                         # metadata-only split


# ------------------------------ pipeline glue ---------------------------------
def cut_or_pad(audio_1n, size):
    n = audio_1n.shape[1]
    if n < size:
        return jnp.pad(audio_1n, ((0, 0), (0, size - n)))
    return audio_1n[:, :size]


def inference_pipeline_forward(waveform, video_thwc):
    """Audiovisual forward pass (preprocessing hot path in Pallas)."""
    audio = process_audio(waveform)        # (1, N) lane-dense
    video = process_video(video_thwc)      # (T, C, H, W)
    rate_ratio = audio.shape[1] // video.shape[0]
    assert 530 < rate_ratio < 670, "The video frame rate should be between 24 and 30 fps."
    if rate_ratio != 640:
        audio = cut_or_pad(audio, video.shape[0] * 640)
    # TODO(synk): the pretrained ModelModule (cfg.pretrained_model_path checkpoint) has
    # no in-script definition, so the transcript decode step cannot be reproduced; the
    # pipeline returns the fully preprocessed audio/video tensors instead.
    return audio.reshape(-1, 1), video     # (N, 1) view matches the torch layout


# ---------------------------------- test --------------------------------------
if __name__ == "__main__":
    key = jax.random.PRNGKey(0)
    k_a, k_v, k_g, k_m = jax.random.split(key, 4)

    T, H, W, C = 8, 16, 16, 3            # 8 video frames, 16x16 RGB
    N = T * 640                          # 5120 audio samples @ 16 kHz / 25 fps
    n_channels = 2                       # stereo waveform

    waveform = jax.random.normal(k_a, (n_channels, N), dtype=jnp.float32)
    video = jax.random.randint(k_v, (T, H, W, C), 0, 256,
                               dtype=jnp.int32).astype(jnp.uint8)

    audio_out, video_out = inference_pipeline_forward(waveform, video)
    audio_out = jax.block_until_ready(audio_out)
    video_out = jax.block_until_ready(video_out)

    # reference check (pure JAX) for the Pallas hot paths
    mono_ref = jnp.mean(waveform, axis=0, keepdims=True)
    mu, var = jnp.mean(mono_ref), jnp.var(mono_ref)
    audio_ref = ((mono_ref - mu) * lax.rsqrt(var + AUDIO_LN_EPS)).reshape(-1, 1)
    vf = video.astype(jnp.float32)
    video_ref = jnp.transpose((vf / 255.0 - VIDEO_NORM_MEAN) / VIDEO_NORM_STD,
                              (0, 3, 1, 2))

    assert audio_out.shape == (N, 1) and video_out.shape == (T, C, H, W)
    assert jnp.allclose(audio_out, audio_ref, atol=1e-4, rtol=1e-4)
    assert jnp.allclose(video_out, video_ref, atol=1e-4, rtol=1e-4)

    # long-audio fallback (two dense passes through HBM), forced for coverage
    audio_2p = process_audio(waveform, max_fused_bytes=0).reshape(-1, 1)
    audio_2p = jax.block_until_ready(audio_2p)
    assert jnp.allclose(audio_2p, audio_ref, atol=1e-4, rtol=1e-4)

    # odd-length mono waveform: exercises the padded / masked tail
    N2 = 5000
    w2 = jax.random.normal(k_m, (1, N2), dtype=jnp.float32)
    a2 = jax.block_until_ready(process_audio(w2))
    mu2, var2 = jnp.mean(w2), jnp.var(w2)
    a2_ref = (w2 - mu2) * lax.rsqrt(var2 + AUDIO_LN_EPS)
    assert jnp.allclose(a2, a2_ref, atol=1e-4, rtol=1e-4)

    # grayscale path (C == 1): no pre-kernel transpose needed
    gvid = jax.random.randint(k_g, (T, H, W, 1), 0, 256,
                              dtype=jnp.int32).astype(jnp.uint8)
    vg = jax.block_until_ready(process_video(gvid))
    vg_ref = jnp.transpose(
        (gvid.astype(jnp.float32) / 255.0 - VIDEO_NORM_MEAN) / VIDEO_NORM_STD,
        (0, 3, 1, 2))
    assert jnp.allclose(vg, vg_ref, atol=1e-4, rtol=1e-4)

    print("KERNEL_OK")
</pallas_src>

<mosaic_0001>
module attributes {stable_mosaic.version = 11 : i64} {
  func.func @_audio_fused_kernel(%arg0: i32, %arg1: i32, %arg2: memref<2x40x128xf32, #tpu.memory_space<vmem>>, %arg3: memref<40x128xf32, #tpu.memory_space<vmem>>, %arg4: memref<3xf32, #tpu.memory_space<smem>>) attributes {dimension_semantics = [#tpu.dimension_semantics<arbitrary>, #tpu.dimension_semantics<arbitrary>], iteration_bounds = array<i64: 2, 1>, scalar_prefetch = 0 : i64, scratch_operands = 1 : i64, tpu.core_type = #tpu.core_type<tc>, window_params = [{transform_indices = @transform_0, window_bounds = array<i64: 2, 40, 128>}, {pipeline_mode = #tpu.pipeline_mode<synchronous>, transform_indices = @transform_1, window_bounds = array<i64: 40, 128>}]} {
    %c0_i32 = arith.constant 0 : i32
    %0 = arith.cmpi eq, %arg0, %c0_i32 : i32
    %c0_i32_0 = arith.constant 0 : i32
    %1 = arith.cmpi eq, %arg1, %c0_i32_0 : i32
    %2 = arith.andi %0, %1 : i1
    %3 = arith.extui %2 : i1 to i32
    %c0_i32_1 = arith.constant 0 : i32
    %4 = arith.cmpi ne, %3, %c0_i32_1 : i32
    scf.if %4 {
      %cst = arith.constant 0.000000e+00 : f32
      %c0 = arith.constant 0 : index
      %11 = memref.load %arg4[%c0] : memref<3xf32, #tpu.memory_space<smem>>
      memref.store %cst, %arg4[%c0] : memref<3xf32, #tpu.memory_space<smem>>
      %cst_5 = arith.constant 0.000000e+00 : f32
      %c1 = arith.constant 1 : index
      %12 = memref.load %arg4[%c1] : memref<3xf32, #tpu.memory_space<smem>>
      memref.store %cst_5, %arg4[%c1] : memref<3xf32, #tpu.memory_space<smem>>
      %cst_6 = arith.constant 0.000000e+00 : f32
      %c2 = arith.constant 2 : index
      %13 = memref.load %arg4[%c2] : memref<3xf32, #tpu.memory_space<smem>>
      memref.store %cst_6, %arg4[%c2] : memref<3xf32, #tpu.memory_space<smem>>
    } else {
    }
    %c0_i32_2 = arith.constant 0 : i32
    %5 = arith.cmpi eq, %arg0, %c0_i32_2 : i32
    %6 = arith.extui %5 : i1 to i32
    %c0_i32_3 = arith.constant 0 : i32
    %7 = arith.cmpi ne, %6, %c0_i32_3 : i32
    scf.if %7 {
      %c0 = arith.constant 0 : index
      %c0_5 = arith.constant 0 : index
      %c0_6 = arith.constant 0 : index
      %11 = vector.load %arg2[%c0, %c0_5, %c0_6] : memref<2x40x128xf32, #tpu.memory_space<vmem>>, vector<1x40x128xf32>
      %12 = vector.shape_cast %11 : vector<1x40x128xf32> to vector<40x128xf32>
      %c1 = arith.constant 1 : index
      %c0_7 = arith.constant 0 : index
      %c0_8 = arith.constant 0 : index
      %13 = vector.load %arg2[%c1, %c0_7, %c0_8] : memref<2x40x128xf32, #tpu.memory_space<vmem>>, vector<1x40x128xf32>
      %14 = vector.shape_cast %13 : vector<1x40x128xf32> to vector<40x128xf32>
      %15 = arith.addf %12, %14 : vector<40x128xf32>
      %cst = arith.constant 5.000000e-01 : f32
      %16 = vector.broadcast %cst : f32 to vector<40x128xf32>
      %17 = arith.mulf %15, %16 : vector<40x128xf32>
      %c40_i32 = arith.constant 40 : i32
      %18 = arith.muli %arg1, %c40_i32 : i32
      %19 = tpu.iota {dimensions = array<i32: 0>} : vector<40x128xi32>
      %20 = tpu.iota {dimensions = array<i32: 1>} : vector<40x128xi32>
      %c128_i32 = arith.constant 128 : i32
      %21 = arith.muli %18, %c128_i32 : i32
      %c128_i32_9 = arith.constant 128 : i32
      %22 = vector.broadcast %c128_i32_9 : i32 to vector<40x128xi32>
      %23 = arith.muli %19, %22 : vector<40x128xi32>
      %24 = vector.broadcast %21 : i32 to vector<40x128xi32>
      %25 = arith.addi %24, %23 : vector<40x128xi32>
      %26 = arith.addi %25, %20 : vector<40x128xi32>
      %c5120_i32 = arith.constant 5120 : i32
      %27 = vector.broadcast %c5120_i32 : i32 to vector<40x128xi32>
      %28 = arith.cmpi slt, %26, %27 : vector<40x128xi32>
      %c128_i32_10 = arith.constant 128 : i32
      %29 = arith.muli %18, %c128_i32_10 : i32
      %c5120_i32_11 = arith.constant 5120 : i32
      %30 = arith.subi %c5120_i32_11, %29 : i32
      %31 = arith.sitofp %30 : i32 to f32
      %cst_12 = arith.constant 5.120000e+03 : f32
      %32 = arith.minimumf %cst_12, %31 : f32
      %cst_13 = arith.constant 0.000000e+00 : f32
      %33 = vector.broadcast %cst_13 : f32 to vector<40x128xf32>
      %34 = arith.select %28, %17, %33 : vector<40x128xi1>, vector<40x128xf32>
      %35 = vector.shape_cast %34 : vector<40x128xf32> to vector<1x40x128xf32>
      %cst_14 = arith.constant dense<0.000000e+00> : vector<1xf32>
      %36 = vector.multi_reduction <add>, %35, %cst_14 [1, 2] : vector<1x40x128xf32> to vector<1xf32>
      %37 = vector.shape_cast %36 : vector<1xf32> to vector<1x1x1xf32>
      %38 = vector.extract %37[0, 0, 0] : f32 from vector<1x1x1xf32>
      %39 = arith.divf %38, %32 : f32
      %40 = vector.broadcast %39 : f32 to vector<40x128xf32>
      %41 = arith.subf %17, %40 : vector<40x128xf32>
      %cst_15 = arith.constant 0.000000e+00 : f32
      %42 = vector.broadcast %cst_15 : f32 to vector<40x128xf32>
      %43 = arith.select %28, %41, %42 : vector<40x128xi1>, vector<40x128xf32>
      %44 = arith.mulf %43, %43 : vector<40x128xf32>
      %45 = vector.shape_cast %44 : vector<40x128xf32> to vector<1x40x128xf32>
      %cst_16 = arith.constant dense<0.000000e+00> : vector<1xf32>
      %46 = vector.multi_reduction <add>, %45, %cst_16 [1, 2] : vector<1x40x128xf32> to vector<1xf32>
      %47 = vector.shape_cast %46 : vector<1xf32> to vector<1x1x1xf32>
      %48 = vector.extract %47[0, 0, 0] : f32 from vector<1x1x1xf32>
      %c0_17 = arith.constant 0 : index
      %49 = memref.load %arg4[%c0_17] : memref<3xf32, #tpu.memory_space<smem>>
      %c1_18 = arith.constant 1 : index
      %50 = memref.load %arg4[%c1_18] : memref<3xf32, #tpu.memory_space<smem>>
      %c2 = arith.constant 2 : index
      %51 = memref.load %arg4[%c2] : memref<3xf32, #tpu.memory_space<smem>>
      %52 = arith.addf %49, %32 : f32
      %53 = arith.subf %39, %50 : f32
      %54 = arith.divf %32, %52 : f32
      %55 = arith.mulf %53, %54 : f32
      %56 = arith.addf %50, %55 : f32
      %57 = arith.addf %51, %48 : f32
      %58 = arith.mulf %53, %53 : f32
      %59 = arith.mulf %49, %32 : f32
      %60 = arith.divf %59, %52 : f32
      %61 = arith.mulf %58, %60 : f32
      %62 = arith.addf %57, %61 : f32
      %c0_19 = arith.constant 0 : index
      %63 = memref.load %arg4[%c0_19] : memref<3xf32, #tpu.memory_space<smem>>
      memref.store %52, %arg4[%c0_19] : memref<3xf32, #tpu.memory_space<smem>>
      %c1_20 = arith.constant 1 : index
      %64 = memref.load %arg4[%c1_20] : memref<3xf32, #tpu.memory_space<smem>>
      memref.store %56, %arg4[%c1_20] : memref<3xf32, #tpu.memory_space<smem>>
      %c2_21 = arith.constant 2 : index
      %65 = memref.load %arg4[%c2_21] : memref<3xf32, #tpu.memory_space<smem>>
      memref.store %62, %arg4[%c2_21] : memref<3xf32, #tpu.memory_space<smem>>
      %c40_i32_22 = arith.constant 40 : i32
      %66 = arith.muli %arg1, %c40_i32_22 : i32
      %67 = tpu.assume_multiple %66, 8 : i32
      %68 = arith.index_cast %67 : i32 to index
      %c0_23 = arith.constant 0 : index
      %69 = vector.load %arg3[%68, %c0_23] : memref<40x128xf32, #tpu.memory_space<vmem>>, vector<40x128xf32>
      tpu.vector_store %arg3[%68, %c0_23], %17 {strides = array<i32>} : memref<40x128xf32, #tpu.memory_space<vmem>>, vector<40x128xf32>,
      %c0_i32_24 = arith.constant 0 : i32
      %70 = arith.cmpi eq, %arg1, %c0_i32_24 : i32
      %71 = arith.extui %70 : i1 to i32
      %c0_i32_25 = arith.constant 0 : i32
      %72 = arith.cmpi ne, %71, %c0_i32_25 : i32
      scf.if %72 {
        %73 = arith.divf %62, %52 : f32
        %cst_26 = arith.constant 9.99999974E-6 : f32
        %74 = arith.addf %73, %cst_26 : f32
        %75 = math.rsqrt %74 : f32
        %c2_27 = arith.constant 2 : index
        %76 = memref.load %arg4[%c2_27] : memref<3xf32, #tpu.memory_space<smem>>
        memref.store %75, %arg4[%c2_27] : memref<3xf32, #tpu.memory_space<smem>>
      } else {
      }
    } else {
    }
    %c1_i32 = arith.constant 1 : i32
    %8 = arith.cmpi eq, %arg0, %c1_i32 : i32
    %9 = arith.extui %8 : i1 to i32
    %c0_i32_4 = arith.constant 0 : i32
    %10 = arith.cmpi ne, %9, %c0_i32_4 : i32
    scf.if %10 {
      %c40_i32 = arith.constant 40 : i32
      %11 = arith.muli %arg1, %c40_i32 : i32
      %12 = tpu.assume_multiple %11, 8 : i32
      %13 = arith.index_cast %12 : i32 to index
      %c0 = arith.constant 0 : index
      %14 = vector.load %arg3[%13, %c0] : memref<40x128xf32, #tpu.memory_space<vmem>>, vector<40x128xf32>
      %c1 = arith.constant 1 : index
      %15 = memref.load %arg4[%c1] : memref<3xf32, #tpu.memory_space<smem>>
      %16 = vector.broadcast %15 : f32 to vector<40x128xf32>
      %17 = arith.subf %14, %16 : vector<40x128xf32>
      %c2 = arith.constant 2 : index
      %18 = memref.load %arg4[%c2] : memref<3xf32, #tpu.memory_space<smem>>
      %19 = vector.broadcast %18 : f32 to vector<40x128xf32>
      %20 = arith.mulf %17, %19 : vector<40x128xf32>
      %21 = arith.index_cast %12 : i32 to index
      %c0_5 = arith.constant 0 : index
      %22 = vector.load %arg3[%21, %c0_5] : memref<40x128xf32, #tpu.memory_space<vmem>>, vector<40x128xf32>
      tpu.vector_store %arg3[%21, %c0_5], %20 {strides = array<i32>} : memref<40x128xf32, #tpu.memory_space<vmem>>, vector<40x128xf32>,
    } else {
    }
    return
  }
  func.func @transform_0(%arg0: i32, %arg1: i32) -> (i32, i32, i32) {
    %c1_i32 = arith.constant 1 : i32
    %0 = arith.subi %c1_i32, %arg0 : i32
    %1 = arith.muli %arg1, %0 : i32
    %c0_i32 = arith.constant 0 : i32
    %c0_i32_0 = arith.constant 0 : i32
    %c0_i32_1 = arith.constant 0 : i32
    return %c0_i32, %1, %c0_i32_0 : i32, i32, i32
  }
  func.func @transform_1(%arg0: i32, %arg1: i32) -> (i32, i32) {
    %c0_i32 = arith.constant 0 : i32
    %c0_i32_0 = arith.constant 0 : i32
    %c0_i32_1 = arith.constant 0 : i32
    return %c0_i32, %c0_i32_0 : i32, i32
  }
}

</mosaic_0001>

<bundles_post_ra>
// kernel: tpu_custom_call.1
= control target key start
LH: loop header
LB: loop body
LE: loop exit
PB: predicated region body
PF: predicated region fallthrough
CT: control target
= control target key end

     0   :  { %6 = vsyncpa [#allocation4], 0  ;;  %s682_s0 = inlined_call_operand.hbm [shape: f32[2,40,128], index: 0, kind: input, shape index: {}]   ;;  %s683_s1 = inlined_call_operand.hbm [shape: f32[40,128], index: 1, kind: output, shape index: {}]  }
   0x1   :  { %8 = vsyncpa [#allocation4 + $0x1], 0 }
   0x2   :  { %9 = vsyncpa [#allocation5], 0  ;;  %s596_s6 = smov 0   ;;  %s598_s7 = smov 0  }
   0x3   :  { %s600_s8 = smov 0  }
   0x4 LB: > { %s411_s9 = sadd.s32 4294967295, %s577_s8   ;;  %s27_s10 = sadd.s32 1, %s573_s7  ;;  %s577_s8 = sphi %s600_s8, %s15_s8   ;;  %s573_s7 = sphi %s598_s7, %s687_s7   ;;  %s569_s6 = sphi %s596_s6, %s686_s6  }
   0x5   : > { %p29_p0 = scmp.ge.s32.totalorder %s27_s10, 2  ;;  %p457_p1 = scmp.lt.s32.totalorder %s577_s8, 2 }
   0x6   : > { %p458_p2 = scmp.eq.s32.totalorder %s577_s8, 0  ;;  %s579_s11 = smov [#allocation3]  }
   0x7   : > { %s689_s10 = smov (%p29_p0, %s27_s10), 0  ;;  %s109_s12 = sshll.u32 %s579_s11, 4  ;;  %s110_s12 = int_to_ptr.vmem [resolvable:$true] %s109_s12 }
   0x8   : > { %p617_p3 = pnand %p458_p2, %p457_p1  ;;  %p415_p4 = scmp.ge.s32.totalorder %s577_s8, 1 }
   0x9   : > { %p117_p5 = scmp.lt.s32.totalorder %s577_s8, 3  ;;  %s508_s14 = scalar_lea.vmem %s110_s12, 1280 }
   0xa   : > { %p499_p6 = pneg %p617_p3  ;;  %p509_p7 = scmp.ne.s32.totalorder %s110_s12, %s508_s14 }
   0xb   : > { %s515_s15 = scalar_lea.vmem %s110_s12, 2560  ;;  %p516_p10 = scmp.lt.s32.totalorder %s110_s12, %s110_s12 }
   0xc   : > { %p511_p8 = pnand %p509_p7, %p499_p6  ;;  %p517_p11 = scmp.lt.s32.totalorder %s515_s15, %s508_s14 }
   0xe   : > { %p512_p9 = pneg %p511_p8  ;;  %p518_p12 = por %p517_p11, %p516_p10 }
  0x10   : > { %p519_p13 = pnand %p518_p12, %p512_p9 }
  0x12   : > { %522 = shalt.err (!%p519_p13)
}
  0x13   : > { %s580_s16 = smov 128   ;;  %s581_s17 = smov 8  }
  0x14   : > { %456 = dma.hbm_to_vmem [thread:$0]  (!%p617_p3), %s682_s0, 1280, %s110_s12, [#allocation4], %s580_s16, %s580_s16, %s581_s17  }
  0x15   : > { %p118_p0 = pnand %p415_p4, %p117_p5 }
  0x16   : > { %p459_p1 = scmp.eq.s32.totalorder (!%p118_p0), %s411_s9, 0 }
  0x17   : > { %121 = sbr.rel (%p118_p0) target bundleno = 582 (0x246), region = 24 }
  0x1c   : > { %560 = dma.done.wait (%p459_p1), [#allocation4], 1280  }
  0x1d   : > { %562 = vsyncadd (%p459_p1), [#allocation4], 4294966016  ;;  %p144_p2 = scmp.eq.s32.totalorder %s569_s6, 0  ;;  %s582_s20 = smov 0.0  }
  0x1e   : > { %p418_p6 = scmp.ne.s32.totalorder %s569_s6, 0 }
  0x1f   : > { %446 = sst [smem:[#allocation2]] (%p144_p2), %s582_s20 }
  0x20   : > { %447 = sst [smem:[#allocation2 + $0x1]] (%p144_p2), %s582_s20  ;;  %158 = sbr.rel (%p418_p6) target bundleno = 551 (0x227), region = 36 }
  0x21   : > { %448 = sst [smem:[#allocation2 + $0x2]] (%p144_p2), %s582_s20 }
  0x22   : > { %s264_s23 = sld [smem:[#allocation2]] (!%p418_p6) }
  0x23   : > { %s424_s25 = sld [smem:[#allocation2 + $0x1]] (!%p418_p6) }
  0x24   : > { %s425_s27 = sld [smem:[#allocation2 + $0x2]] (!%p418_p6) }
  0x25   : > { %v159_v0 = vld [vmem:[#allocation3] sm:$0xff]  ;;  %v160_v1 = vld [vmem:[#allocation3 + $0x8] sm:$0xff]  ;;  %v161_v2 = vld [vmem:[#allocation3 + $0x10] sm:$0xff]  ;;  %v180_v3 = vlaneseq }
  0x26   : > { %v162_v4 = vld [vmem:[#allocation3 + $0x18] sm:$0xff]  ;;  %v163_v5 = vld [vmem:[#allocation3 + $0x20] sm:$0xff]  ;;  %v419_v6 = vld [vmem:[#allocation3 + $0x28] sm:$0xff] }
  0x27   : > { %v420_v7 = vld [vmem:[#allocation3 + $0x30] sm:$0xff]  ;;  %v421_v8 = vld [vmem:[#allocation3 + $0x38] sm:$0xff]  ;;  %v422_v9 = vld [vmem:[#allocation3 + $0x40] sm:$0xff]  ;;  %v170_v10 = vadd.f32 %v419_v6, %v159_v0  ;;  %v181_v11 = vshrl.u32 %v180_v3, 7  ;;  %v187_v16 = vand.u32 127, %v180_v3 }
  0x28   : > { %v423_v12 = vld [vmem:[#allocation3 + $0x48] sm:$0xff]  ;;  %v171_v13 = vadd.f32 %v420_v7, %v160_v1  ;;  %v172_v14 = vadd.f32 %v421_v8, %v161_v2  ;;  %v173_v15 = vadd.f32 %v422_v9, %v162_v4  ;;  %s267_s24 = sadd.f32 5120.0, %s264_s23  ;;  %s277_s28 = smul.f32 5120.0, %s264_s23 }
  0x29   : > { %v174_v17 = vadd.f32 %v423_v12, %v163_v5  ;;  %v175_v18 = vmul.f32 0.5, %v170_v10  ;;  %v182_v19 = vadd.s32 8, %v181_v11  ;;  %v183_v20 = vadd.s32 16, %v181_v11 }
  0x2a   : > { %v176_v21 = vmul.f32 0.5, %v171_v13  ;;  %v177_v22 = vmul.f32 0.5, %v172_v14  ;;  %v178_v23 = vmul.f32 0.5, %v173_v15  ;;  %v184_v24 = vadd.s32 24, %v181_v11  ;;  %285 = sst [smem:[#allocation2]] %s267_s24 }
  0x2b   : > { %v179_v25 = vmul.f32 0.5, %v174_v17  ;;  %v185_v26 = vadd.s32 32, %v181_v11  ;;  %v189_v27 = vmul.u32 128, %v181_v11  ;;  %v190_v28 = vmul.u32 128, %v182_v19  ;;  %292 = vst [vmem:[#allocation6] sm:$0xff] %v175_v18 }
  0x2c   : > { %v191_v29 = vmul.u32 128, %v183_v20  ;;  %v192_v30 = vmul.u32 128, %v184_v24  ;;  %293 = vst [vmem:[#allocation6 + $0x8] sm:$0xff] %v176_v21  ;;  %294 = vst [vmem:[#allocation6 + $0x10] sm:$0xff] %v177_v22  ;;  %v269_v9 = vstv %s267_s24 }
  0x2d   : > { %295 = vst [vmem:[#allocation6 + $0x18] sm:$0xff] %v178_v23  ;;  %v193_v31 = vmul.u32 128, %v185_v26  ;;  %v200_v32 = vadd.s32 %v189_v27, %v187_v16  ;;  %v201_v33 = vadd.s32 %v190_v28, %v187_v16  ;;  %296 = vst [vmem:[#allocation6 + $0x20] sm:$0xff] %v179_v25  ;;  %493 = vrcp.f32 %v269_v9 }
  0x2e   : > { %v202_v34 = vadd.s32 %v191_v29, %v187_v16  ;;  %v203_v35 = vadd.s32 %v192_v30, %v187_v16 }
  0x2f   : > { %v204_v36 = vadd.s32 %v193_v31, %v187_v16  ;;  %vm205_vm0 = vcmp.lt.s32.totalorder %v200_v32, 5120  ;;  %vm206_vm1 = vcmp.lt.s32.totalorder %v201_v33, 5120 }
  0x30   : > { %vm207_vm2 = vcmp.lt.s32.totalorder %v202_v34, 5120  ;;  %vm208_vm3 = vcmp.lt.s32.totalorder %v203_v35, 5120  ;;  %v213_v37 = vsel %vm205_vm0, %v175_v18, 0.0  ;;  %v214_v38 = vsel %vm206_vm1, %v176_v21, 0.0 }
  0x31   : > { %vm209_vm4 = vcmp.lt.s32.totalorder %v204_v36, 5120  ;;  %v215_v39 = vsel %vm207_vm2, %v177_v22, 0.0  ;;  %v218_v40 = vadd.f32 %v214_v38, %v213_v37  ;;  %v216_v41 = vsel %vm208_vm3, %v178_v23, 0.0 }
  0x32   : > { %v217_v43 = vsel %vm209_vm4, %v179_v25, 0.0 }
  0x33   : > { %v219_v42 = vadd.f32 %v218_v40, %v215_v39 }
  0x35   : > { %v220_v44 = vadd.f32 %v219_v42, %v216_v41 }
  0x37   : > { %v221_v45 = vadd.f32 %v220_v44, %v217_v43 }
  0x39   : > { %222 = vadd.xlane.f32.xlu0 %v221_v45 }
  0x3a   : > { %v494_v16 = vpop.eup %493 }
  0xc2   : > { %v223_v46 = vpop.xlane.xlu0 %222 }
  0xc3   : > { %v224_v47 = vrot.slane %v223_v46, 4 }
  0xc5   : > { %v225_v48 = vadd.f32 %v224_v47, %v223_v46 }
  0xc7   : > { %v226_v49 = vrot.slane %v225_v48, 2 }
  0xc9   : > { %v227_v50 = vadd.f32 %v226_v49, %v225_v48 }
  0xcb   : > { %v228_v51 = vrot.slane %v227_v50, 1 }
  0xcd   : > { %v229_v52 = vadd.f32 %v228_v51, %v227_v50 }
  0xcf   : > { %434 = vpush %v229_v52 }
 0x100   : > { %s643_s21 = spop %434 }
 0x101   : > { %s234_s22 = smul.f32 0.0001953125, %s643_s21 }
 0x103   : > { %v235_v53 = vstv %s234_s22  ;;  %s268_s26 = ssub.f32 %s234_s22, %s424_s25 }
 0x104   : > { %v236_v54 = vsub.f32 %v175_v18, %v235_v53  ;;  %v237_v55 = vsub.f32 %v176_v21, %v235_v53  ;;  %v238_v56 = vsub.f32 %v177_v22, %v235_v53  ;;  %v239_v57 = vsub.f32 %v178_v23, %v235_v53 }
 0x105   : > { %v240_v58 = vsub.f32 %v179_v25, %v235_v53  ;;  %s276_s30 = smul.f32 %s268_s26, %s268_s26 }
 0x106   : > { %v241_v59 = vsel %vm205_vm0, %v236_v54, 0.0  ;;  %v242_v60 = vsel %vm206_vm1, %v237_v55, 0.0  ;;  %v243_v61 = vsel %vm207_vm2, %v238_v56, 0.0  ;;  %v244_v0 = vsel %vm208_vm3, %v239_v57, 0.0 }
 0x107   : > { %v246_v62 = vmul.f32 %v241_v59, %v241_v59  ;;  %v247_v63 = vmul.f32 %v242_v60, %v242_v60  ;;  %v248_v1 = vmul.f32 %v243_v61, %v243_v61  ;;  %v245_v3 = vsel %vm209_vm4, %v240_v58, 0.0 }
 0x108   : > { %v249_v4 = vmul.f32 %v244_v0, %v244_v0  ;;  %v250_v6 = vmul.f32 %v245_v3, %v245_v3 }
 0x109   : > { %v251_v2 = vadd.f32 %v247_v63, %v246_v62 }
 0x10b   : > { %v252_v5 = vadd.f32 %v251_v2, %v248_v1 }
 0x10d   : > { %v253_v7 = vadd.f32 %v252_v5, %v249_v4 }
 0x10f   : > { %v254_v8 = vadd.f32 %v253_v7, %v250_v6 }
 0x111   : > { %255 = vadd.xlane.f32.xlu0 %v254_v8 }
 0x19a   : > { %v256_v10 = vpop.xlane.xlu0 %255 }
 0x19b   : > { %v257_v11 = vrot.slane %v256_v10, 4 }
 0x19d   : > { %v258_v12 = vadd.f32 %v257_v11, %v256_v10 }
 0x19f   : > { %v259_v13 = vrot.slane %v258_v12, 2 }
 0x1a1   : > { %v260_v14 = vadd.f32 %v259_v13, %v258_v12 }
 0x1a3   : > { %v261_v15 = vrot.slane %v260_v14, 1 }
 0x1a5   : > { %v262_v17 = vadd.f32 %v261_v15, %v260_v14 }
 0x1a7   : > { %436 = vpush %v262_v17 }
 0x1a8   : > { %438 = vpush %v494_v16 }
 0x1d8   : > { %s437_s29 = spop %436 }
 0x1d9   : > { %s439_s2 = spop %438  ;;  %s275_s11 = sadd.f32 %s437_s29, %s425_s27 }
 0x1da   : > { %s272_s3 = smul.f32 5120.0, %s439_s2 }
 0x1db   : > { %s281_s4 = smul.f32 %s439_s2, %s277_s28 }
 0x1dc   : > { %s273_s5 = smul.f32 %s272_s3, %s268_s26 }
 0x1dd   : > { %s282_s12 = smul.f32 %s281_s4, %s276_s30 }
 0x1de   : > { %s274_s13 = sadd.f32 %s424_s25, %s273_s5 }
 0x1df   : > { %s283_s14 = sadd.f32 %s282_s12, %s275_s11 }
 0x1e0   : > { %287 = sst [smem:[#allocation2 + $0x1]] %s274_s13 }
 0x1e1   : > { %s303_s15 = smul.f32 %s439_s2, %s283_s14 }
 0x1e3   : > { %s304_s16 = sadd.f32 1e-05, %s303_s15 }
 0x1e5   : > { %v305_v18 = vstv %s304_s16 }
 0x1e6   : > { %495 = vrsqrt.f32 %v305_v18 }
 0x1f3   : > { %v496_v19 = vpop.eup %495 }
 0x1f4   : > { %440 = vpush %v496_v19 }
 0x225   : > { %s441_s17 = spop %440 }
 0x226   : > { %308 = sst [smem:[#allocation2 + $0x2]] %s441_s17 }
 0x227 PF: > { %p426_p3 = scmp.ne.s32.totalorder %s569_s6, 1 }
 0x228   : > { %s427_s18 = sld [smem:[#allocation2 + $0x1]] (!%p426_p3) }
 0x229   : > { %312 = sbr.rel (%p426_p3) target bundleno = 566 (0x236), region = 44  ;;  %s428_s19 = sld [smem:[#allocation2 + $0x2]] (!%p426_p3) }
 0x22e   : > { %v315_v20 = vld [vmem:[#allocation6] sm:$0xff]  ;;  %v316_v21 = vld [vmem:[#allocation6 + $0x8] sm:$0xff]  ;;  %v317_v22 = vld [vmem:[#allocation6 + $0x10] sm:$0xff]  ;;  %v321_v25 = vstv %s427_s18 }
 0x22f   : > { %v318_v23 = vld [vmem:[#allocation6 + $0x18] sm:$0xff]  ;;  %v319_v24 = vld [vmem:[#allocation6 + $0x20] sm:$0xff]  ;;  %v322_v26 = vsub.f32 %v315_v20, %v321_v25  ;;  %v328_v27 = vstv %s428_s19  ;;  %v323_v28 = vsub.f32 %v316_v21, %v321_v25  ;;  %v324_v29 = vsub.f32 %v317_v22, %v321_v25 }
 0x230   : > { %v325_v30 = vsub.f32 %v318_v23, %v321_v25  ;;  %v326_v31 = vsub.f32 %v319_v24, %v321_v25 }
 0x231   : > { %v329_v32 = vmul.f32 %v328_v27, %v322_v26  ;;  %v330_v33 = vmul.f32 %v328_v27, %v323_v28  ;;  %v331_v34 = vmul.f32 %v328_v27, %v324_v29 }
 0x232   : > { %v332_v35 = vmul.f32 %v328_v27, %v325_v30  ;;  %v333_v36 = vmul.f32 %v328_v27, %v326_v31 }
 0x233   : > { %334 = vst [vmem:[#allocation6] sm:$0xff] %v329_v32  ;;  %335 = vst [vmem:[#allocation6 + $0x8] sm:$0xff] %v330_v33 }
 0x234   : > { %336 = vst [vmem:[#allocation6 + $0x10] sm:$0xff] %v331_v34  ;;  %337 = vst [vmem:[#allocation6 + $0x18] sm:$0xff] %v332_v35 }
 0x235   : > { %338 = vst [vmem:[#allocation6 + $0x20] sm:$0xff] %v333_v36 }
 0x236 PF: > { %p658_p4 = scmp.eq.s32.totalorder %s411_s9, 1  ;;  %s583_s20 = smov [#allocation6]  }
 0x237   : > { %s345_s21 = sshll.u32 %s583_s20, 4  ;;  %s346_s21 = int_to_ptr.vmem [resolvable:$true] %s345_s21 }
 0x238   : > { %s523_s22 = scalar_lea.vmem %s346_s21, 640  ;;  %p530_p9 = scmp.lt.s32.totalorder %s346_s21, %s346_s21 }
 0x239   : > { %p524_p5 = scmp.ne.s32.totalorder %s346_s21, %s523_s22  ;;  %p531_p10 = scmp.lt.s32.totalorder %s523_s22, %s523_s22 }
 0x23b   : > { %p525_p7 = pnand %p524_p5, %p658_p4  ;;  %p532_p11 = por %p531_p10, %p530_p9 }
 0x23d   : > { %p526_p8 = pneg %p525_p7 }
 0x23f   : > { %p533_p12 = pnand %p532_p11, %p526_p8 }
 0x241   : > { %536 = shalt.err (!%p533_p12)
}
 0x242   : > { %s584_s23 = smov 128   ;;  %s585_s9 = smov 8  }
 0x243   : > { %450 = dma.vmem_to_hbm [thread:$0]  (%p658_p4), %s346_s21, 640, %s683_s1, [#allocation5], %s584_s23, %s584_s23, %s585_s9  }
 0x244   : > { %564 = dma.done.wait (%p658_p4), [#allocation5], 640  }
 0x245   : > { %566 = vsyncadd (%p658_p4), [#allocation5], 4294966656 }
 0x246 PF: > { %s15_s8 = sadd.s32 1, %s577_s8   ;;  %s686_s6 = smov %s573_s7 }
 0x247   : > { %p12_p13 = scmp.ge.s32.totalorder %s15_s8, 4   ;;  %s687_s7 = smov %s689_s10 }
 0x249   :  { %14 = sbr.rel (!%p12_p13) target bundleno = 4 (0x4), region = 86 }
 0x24e   :  { %361 = vsyncpa [#allocation4], 1 }
 0x24f   :  { %363 = vsyncpa [#allocation4 + $0x1], 1 }
 0x250   :  { %364 = vsyncpa [#allocation5], 1 }
 0x251   :  { %366 = vsyncpa [#allocation5 + $0x1], 1 }

</bundles_post_ra>
